<compile_context>
chip_gen: v5e
topology: v5e:2x2
jax: 0.10.0
libtpu: 0.0.40
codegen_flags: <defaults>
</compile_context>

<pallas_src>
import functools

import numpy as np
import jax
import jax.numpy as jnp
from jax import lax
from jax.experimental import pallas as pl
from jax.experimental.pallas import tpu as pltpu  # noqa: F401 (kept for TPU-specific tuning hooks)

# ---------------------------------------------------------------------------
# Hyper-parameters (globals, matching the PyTorch module's free variables)
# ---------------------------------------------------------------------------
d_model = 32
d_k = d_v = 8
n_heads = 4
LN_EPS = 1e-5          # nn.LayerNorm default
NEG_INF = -1e9         # masked_fill value in the reference


# ---------------------------------------------------------------------------
# Shared attention tail: per-head scores/softmax/context + fused output
# projection accumulation + residual + LayerNorm.
# ---------------------------------------------------------------------------
def _attention_tail(residual, proj_q, proj_k, proj_v, mask_ref,
                    wo_ref, bo_ref, gamma_ref, beta_ref, out_ref, attn_ref):
    """residual : (Nq, D)       raw query rows (also the residual path)
       proj_q   : (Nq, 3*H*dk)  fused projection of query rows  (Q cols used)
       proj_k   : (Nk, 3*H*dk)  fused projection of key rows    (K cols used)
       proj_v   : (Nk, 3*H*dk)  fused projection of value rows  (V cols used)
       mask_ref : (Nq, Nk)      batch-folded mask (>0.5 == masked out)
    """
    HDK = n_heads * d_k
    HDKV = 2 * HDK
    scale = 1.0 / np.sqrt(d_k)

    masked = mask_ref[...] > 0.5                       # hoisted out of the loop
    # Output projection accumulated per head -> no ctx scratch round-trip.
    acc = residual + bo_ref[...]

    for h in range(n_heads):                           # H = 4 (batch folded)
        qh = proj_q[:, h * d_k:(h + 1) * d_k]                       # (Nq, dk)
        kh = proj_k[:, HDK + h * d_k:HDK + (h + 1) * d_k]           # (Nk, dk)
        vh = proj_v[:, HDKV + h * d_v:HDKV + (h + 1) * d_v]         # (Nk, dv)

        # contract dk of both operands directly: no explicit transpose
        scores = lax.dot_general(qh, kh, (((1,), (1,)), ((), ())),
                                 preferred_element_type=jnp.float32) * scale
        scores = jnp.where(masked, NEG_INF, scores)
        m = jnp.max(scores, axis=-1, keepdims=True)
        e = jnp.exp(scores - m)
        attn = e / jnp.sum(e, axis=-1, keepdims=True)   # exact softmax
        attn_ref[h] = attn                              # one dense tile store / head

        ctx = jnp.dot(attn, vh, preferred_element_type=jnp.float32)  # (Nq, dv)
        acc = acc + jnp.dot(ctx, wo_ref[h * d_v:(h + 1) * d_v, :],
                            preferred_element_type=jnp.float32)

    # residual + LayerNorm
    mu = jnp.mean(acc, axis=-1, keepdims=True)
    var = jnp.mean(jnp.square(acc - mu), axis=-1, keepdims=True)
    out_ref[...] = ((acc - mu) * lax.rsqrt(var + LN_EPS) * gamma_ref[...]
                    + beta_ref[...])


# ---------------------------------------------------------------------------
# Kernels: specialized self-attention path and general (cross-attention) path
# ---------------------------------------------------------------------------
def mha_self_kernel(x_ref, mask_ref, wqkv_ref, bqkv_ref, wo_ref, bo_ref,
                    gamma_ref, beta_ref, out_ref, attn_ref):
    x = x_ref[...]                                               # (N, D)
    proj = jnp.dot(x, wqkv_ref[...],
                   preferred_element_type=jnp.float32) + bqkv_ref[...]
    _attention_tail(x, proj, proj, proj, mask_ref,
                    wo_ref, bo_ref, gamma_ref, beta_ref, out_ref, attn_ref)


def mha_cross_kernel(q_ref, k_ref, v_ref, mask_ref, wqkv_ref, bqkv_ref,
                     wo_ref, bo_ref, gamma_ref, beta_ref, out_ref, attn_ref):
    xq = q_ref[...]
    wqkv = wqkv_ref[...]
    bqkv = bqkv_ref[...]
    proj_q = jnp.dot(xq, wqkv, preferred_element_type=jnp.float32) + bqkv
    proj_k = jnp.dot(k_ref[...], wqkv, preferred_element_type=jnp.float32) + bqkv
    proj_v = jnp.dot(v_ref[...], wqkv, preferred_element_type=jnp.float32) + bqkv
    _attention_tail(xq, proj_q, proj_k, proj_v, mask_ref,
                    wo_ref, bo_ref, gamma_ref, beta_ref, out_ref, attn_ref)


# ---------------------------------------------------------------------------
# Wrapper: one grid-free pallas_call, whole (tiny) problem resident in VMEM
# ---------------------------------------------------------------------------
def multi_head_attention(Q, K, V, attn_mask, params, *, self_attention=False):
    """Q:(B,Lq,D)  K,V:(B,Lk,D)  attn_mask:(B,Lq,Lk) (>0 == masked out).

    `self_attention` is a static flag: set True when Q, K and V are the same
    tensor to take the single-projection specialized path.
    Returns (out (B,Lq,D), attn (B,H,Lq,Lk)) matching the PyTorch module.
    """
    B, Lq, D = Q.shape
    Lk = K.shape[1]
    w_qkv, b_qkv, wo, bo, gamma, beta = params

    q2 = Q.reshape(B * Lq, D)
    mask_f = attn_mask.astype(jnp.float32)

    # Batch folding: a single (B*Lq, B*Lk) score slab per head.  Cross-batch
    # blocks are masked so the folded softmax equals per-batch softmax.
    eye = jnp.eye(B, dtype=jnp.float32)
    big_mask = jnp.where(eye[:, None, :, None] > 0.0,
                         mask_f[:, :, None, :], 1.0).reshape(B * Lq, B * Lk)

    out_shape = (
        jax.ShapeDtypeStruct((B * Lq, D), jnp.float32),
        jax.ShapeDtypeStruct((n_heads, B * Lq, B * Lk), jnp.float32),
    )

    if self_attention:
        out2, attn_folded = pl.pallas_call(
            mha_self_kernel, out_shape=out_shape,
        )(q2, big_mask, w_qkv, b_qkv, wo, bo, gamma, beta)
    else:
        k2 = K.reshape(B * Lk, D)
        v2 = V.reshape(B * Lk, D)
        out2, attn_folded = pl.pallas_call(
            mha_cross_kernel, out_shape=out_shape,
        )(q2, k2, v2, big_mask, w_qkv, b_qkv, wo, bo, gamma, beta)

    out = out2.reshape(B, Lq, D)
    # wrapper-side layout plumbing: take the diagonal (b, b) blocks of the
    # folded attention slab and restore the PyTorch (B, H, Lq, Lk) layout.
    attn5 = attn_folded.reshape(n_heads, B, Lq, B, Lk)
    idx = jnp.arange(B)
    attn = attn5[:, idx, :, idx, :]            # -> (B, H, Lq, Lk)
    return out, attn


# ---------------------------------------------------------------------------
# Parameters (weights stored as (in, out) == torch W.T; QKV fused at init)
# ---------------------------------------------------------------------------
def init_mha_params(key):
    ks = jax.random.split(key, 8)

    def linear(kw, kb, fin, fout):
        w = jax.random.normal(kw, (fin, fout), jnp.float32) * (1.0 / np.sqrt(fin))
        b = jax.random.normal(kb, (1, fout), jnp.float32) * 0.02
        return w, b

    wq, bq = linear(ks[0], ks[1], d_model, n_heads * d_k)
    wk, bk = linear(ks[2], ks[3], d_model, n_heads * d_k)
    wv, bv = linear(ks[4], ks[5], d_model, n_heads * d_v)
    wo, bo = linear(ks[6], ks[7], n_heads * d_v, d_model)
    gamma = jnp.ones((1, d_model), jnp.float32)
    beta = jnp.zeros((1, d_model), jnp.float32)

    w_qkv = jnp.concatenate([wq, wk, wv], axis=1)    # (D, 3*H*dk)
    b_qkv = jnp.concatenate([bq, bk, bv], axis=1)    # (1, 3*H*dk)
    return (w_qkv, b_qkv, wo, bo, gamma, beta)


# ---------------------------------------------------------------------------
# Pure-JAX reference for correctness checking
# ---------------------------------------------------------------------------
def mha_reference(Q, K, V, attn_mask, params):
    w_qkv, b_qkv, wo, bo, gamma, beta = params
    HDK = n_heads * d_k
    wq, bq = w_qkv[:, :HDK], b_qkv[:, :HDK]
    wk, bk = w_qkv[:, HDK:2 * HDK], b_qkv[:, HDK:2 * HDK]
    wv, bv = w_qkv[:, 2 * HDK:], b_qkv[:, 2 * HDK:]
    B, Lq, D = Q.shape
    Lk = K.shape[1]

    qs = (Q @ wq + bq).reshape(B, Lq, n_heads, d_k).transpose(0, 2, 1, 3)
    ks = (K @ wk + bk).reshape(B, Lk, n_heads, d_k).transpose(0, 2, 1, 3)
    vs = (V @ wv + bv).reshape(B, Lk, n_heads, d_v).transpose(0, 2, 1, 3)
    scores = jnp.einsum('bhqd,bhkd->bhqk', qs, ks,
                        preferred_element_type=jnp.float32) / np.sqrt(d_k)
    scores = jnp.where(attn_mask[:, None, :, :] > 0.5, NEG_INF, scores)
    attn = jax.nn.softmax(scores, axis=-1)
    context = jnp.einsum('bhqk,bhkd->bhqd', attn, vs,
                         preferred_element_type=jnp.float32)
    context = context.transpose(0, 2, 1, 3).reshape(B, Lq, n_heads * d_v)
    out = context @ wo + bo + Q
    mu = out.mean(-1, keepdims=True)
    var = ((out - mu) ** 2).mean(-1, keepdims=True)
    return (out - mu) * jax.lax.rsqrt(var + LN_EPS) * gamma + beta, attn


# ---------------------------------------------------------------------------
# Main
# ---------------------------------------------------------------------------
if __name__ == "__main__":
    key = jax.random.PRNGKey(0)
    kp, kx = jax.random.split(key, 2)

    batch, seq = 2, 8
    params = init_mha_params(kp)

    x = jax.random.normal(kx, (batch, seq, d_model), jnp.float32)

    # padding (last token) + causal mask; 1.0 == masked out
    pad = jnp.zeros((batch, seq), jnp.float32).at[:, -1].set(1.0)
    causal = jnp.triu(jnp.ones((seq, seq), jnp.float32), k=1)
    attn_mask = jnp.clip(pad[:, None, :] + causal[None, :, :], 0.0, 1.0)

    mha_fn = jax.jit(multi_head_attention, static_argnames=("self_attention",))

    # --- specialized self-attention path (Q is K is V) ----------------------
    out, attn = mha_fn(x, x, x, attn_mask, params, self_attention=True)
    jax.block_until_ready((out, attn))
    assert out.shape == (batch, seq, d_model)
    assert attn.shape == (batch, n_heads, seq, seq)

    out_ref, attn_ref_vals = mha_reference(x, x, x, attn_mask, params)
    np.testing.assert_allclose(np.asarray(out), np.asarray(out_ref),
                               atol=1e-3, rtol=1e-3)
    np.testing.assert_allclose(np.asarray(attn), np.asarray(attn_ref_vals),
                               atol=1e-3, rtol=1e-3)
    # exact softmax: attention rows sum to 1
    np.testing.assert_allclose(np.asarray(attn).sum(-1), 1.0, atol=1e-5)

    # --- general (cross-attention capable) fallback path --------------------
    out_g, attn_g = mha_fn(x, x, x, attn_mask, params, self_attention=False)
    jax.block_until_ready((out_g, attn_g))
    np.testing.assert_allclose(np.asarray(out_g), np.asarray(out_ref),
                               atol=1e-3, rtol=1e-3)
    np.testing.assert_allclose(np.asarray(attn_g), np.asarray(attn_ref_vals),
                               atol=1e-3, rtol=1e-3)

    print("KERNEL_OK")
</pallas_src>

<mosaic_0001>
module attributes {stable_mosaic.version = 11 : i64} {
  func.func @mha_self_kernel(%arg0: memref<16x32xf32, #tpu.memory_space<vmem>>, %arg1: memref<16x16xf32, #tpu.memory_space<vmem>>, %arg2: memref<32x96xf32, #tpu.memory_space<vmem>>, %arg3: memref<1x96xf32, #tpu.memory_space<vmem>>, %arg4: memref<32x32xf32, #tpu.memory_space<vmem>>, %arg5: memref<1x32xf32, #tpu.memory_space<vmem>>, %arg6: memref<1x32xf32, #tpu.memory_space<vmem>>, %arg7: memref<1x32xf32, #tpu.memory_space<vmem>>, %arg8: memref<16x32xf32, #tpu.memory_space<vmem>>, %arg9: memref<4x16x16xf32, #tpu.memory_space<vmem>>) attributes {dimension_semantics = [], scalar_prefetch = 0 : i64, scratch_operands = 0 : i64, tpu.core_type = #tpu.core_type<tc>} {
    %c0 = arith.constant 0 : index
    %c0_0 = arith.constant 0 : index
    %0 = vector.load %arg0[%c0, %c0_0] : memref<16x32xf32, #tpu.memory_space<vmem>>, vector<16x32xf32>
    %c0_1 = arith.constant 0 : index
    %c0_2 = arith.constant 0 : index
    %1 = vector.load %arg2[%c0_1, %c0_2] : memref<32x96xf32, #tpu.memory_space<vmem>>, vector<32x96xf32>
    %cst = arith.constant dense<0.000000e+00> : vector<16x96xf32>
    %2 = tpu.matmul %0, %1, %cst {dimension_numbers = #tpu.dot_dimension_numbers<[1], [0], [0], [1], [0, 0, 1, 1], [], []>} : vector<16x32xf32>, vector<32x96xf32>, vector<16x96xf32> -> vector<16x96xf32>
    %c0_3 = arith.constant 0 : index
    %c0_4 = arith.constant 0 : index
    %3 = vector.load %arg3[%c0_3, %c0_4] : memref<1x96xf32, #tpu.memory_space<vmem>>, vector<1x96xf32>
    %4 = vector.broadcast %3 : vector<1x96xf32> to vector<16x96xf32>
    %5 = arith.addf %2, %4 : vector<16x96xf32>
    %c0_5 = arith.constant 0 : index
    %c0_6 = arith.constant 0 : index
    %6 = vector.load %arg1[%c0_5, %c0_6] : memref<16x16xf32, #tpu.memory_space<vmem>>, vector<16x16xf32>
    %cst_7 = arith.constant 5.000000e-01 : f32
    %7 = vector.broadcast %cst_7 : f32 to vector<16x16xf32>
    %8 = arith.cmpf ogt, %6, %7 : vector<16x16xf32>
    %c0_8 = arith.constant 0 : index
    %c0_9 = arith.constant 0 : index
    %9 = vector.load %arg5[%c0_8, %c0_9] : memref<1x32xf32, #tpu.memory_space<vmem>>, vector<1x32xf32>
    %10 = vector.broadcast %9 : vector<1x32xf32> to vector<16x32xf32>
    %11 = arith.addf %0, %10 : vector<16x32xf32>
    %12 = vector.extract_strided_slice %5 {offsets = [0, 0], sizes = [16, 8], strides = [1, 1]} : vector<16x96xf32> to vector<16x8xf32>
    %13 = vector.extract_strided_slice %5 {offsets = [0, 32], sizes = [16, 8], strides = [1, 1]} : vector<16x96xf32> to vector<16x8xf32>
    %14 = vector.extract_strided_slice %5 {offsets = [0, 64], sizes = [16, 8], strides = [1, 1]} : vector<16x96xf32> to vector<16x8xf32>
    %cst_10 = arith.constant dense<0.000000e+00> : vector<16x16xf32>
    %15 = tpu.matmul %12, %13, %cst_10 {dimension_numbers = #tpu.dot_dimension_numbers<[1], [1], [0], [0], [0, 0, 1, 0], [], []>} : vector<16x8xf32>, vector<16x8xf32>, vector<16x16xf32> -> vector<16x16xf32>
    %cst_11 = arith.constant 0.353553385 : f32
    %16 = vector.broadcast %cst_11 : f32 to vector<16x16xf32>
    %17 = arith.mulf %15, %16 : vector<16x16xf32>
    %cst_12 = arith.constant -1.000000e+09 : f32
    %18 = vector.broadcast %cst_12 : f32 to vector<16x16xf32>
    %19 = arith.select %8, %18, %17 : vector<16x16xi1>, vector<16x16xf32>
    %cst_13 = arith.constant dense<0xFF800000> : vector<16xf32>
    %20 = vector.multi_reduction <maximumf>, %19, %cst_13 [1] : vector<16x16xf32> to vector<16xf32>
    %21 = vector.shape_cast %20 : vector<16xf32> to vector<16x1xf32>
    %22 = vector.broadcast %21 : vector<16x1xf32> to vector<16x16xf32>
    %23 = arith.subf %19, %22 : vector<16x16xf32>
    %24 = math.exp %23 : vector<16x16xf32>
    %cst_14 = arith.constant dense<0.000000e+00> : vector<16xf32>
    %25 = vector.multi_reduction <add>, %24, %cst_14 [1] : vector<16x16xf32> to vector<16xf32>
    %26 = vector.shape_cast %25 : vector<16xf32> to vector<16x1xf32>
    %27 = vector.broadcast %26 : vector<16x1xf32> to vector<16x16xf32>
    %28 = arith.divf %24, %27 : vector<16x16xf32>
    %c0_15 = arith.constant 0 : index
    %c0_16 = arith.constant 0 : index
    %c0_17 = arith.constant 0 : index
    %29 = vector.load %arg9[%c0_15, %c0_16, %c0_17] : memref<4x16x16xf32, #tpu.memory_space<vmem>>, vector<1x16x16xf32>
    %30 = vector.shape_cast %29 : vector<1x16x16xf32> to vector<16x16xf32>
    %31 = vector.shape_cast %28 : vector<16x16xf32> to vector<1x16x16xf32>
    tpu.vector_store %arg9[%c0_15, %c0_16, %c0_17], %31 {strides = array<i32>} : memref<4x16x16xf32, #tpu.memory_space<vmem>>, vector<1x16x16xf32>,
    %cst_18 = arith.constant dense<0.000000e+00> : vector<16x8xf32>
    %32 = tpu.matmul %28, %14, %cst_18 {dimension_numbers = #tpu.dot_dimension_numbers<[1], [0], [0], [1], [0, 0, 1, 1], [], []>} : vector<16x16xf32>, vector<16x8xf32>, vector<16x8xf32> -> vector<16x8xf32>
    %c0_19 = arith.constant 0 : index
    %c0_20 = arith.constant 0 : index
    %33 = vector.load %arg4[%c0_19, %c0_20] : memref<32x32xf32, #tpu.memory_space<vmem>>, vector<8x32xf32>
    %cst_21 = arith.constant dense<0.000000e+00> : vector<16x32xf32>
    %34 = tpu.matmul %32, %33, %cst_21 {dimension_numbers = #tpu.dot_dimension_numbers<[1], [0], [0], [1], [0, 0, 1, 1], [], []>} : vector<16x8xf32>, vector<8x32xf32>, vector<16x32xf32> -> vector<16x32xf32>
    %35 = arith.addf %11, %34 : vector<16x32xf32>
    %36 = vector.extract_strided_slice %5 {offsets = [0, 8], sizes = [16, 8], strides = [1, 1]} : vector<16x96xf32> to vector<16x8xf32>
    %37 = vector.extract_strided_slice %5 {offsets = [0, 40], sizes = [16, 8], strides = [1, 1]} : vector<16x96xf32> to vector<16x8xf32>
    %38 = vector.extract_strided_slice %5 {offsets = [0, 72], sizes = [16, 8], strides = [1, 1]} : vector<16x96xf32> to vector<16x8xf32>
    %cst_22 = arith.constant dense<0.000000e+00> : vector<16x16xf32>
    %39 = tpu.matmul %36, %37, %cst_22 {dimension_numbers = #tpu.dot_dimension_numbers<[1], [1], [0], [0], [0, 0, 1, 0], [], []>} : vector<16x8xf32>, vector<16x8xf32>, vector<16x16xf32> -> vector<16x16xf32>
    %cst_23 = arith.constant 0.353553385 : f32
    %40 = vector.broadcast %cst_23 : f32 to vector<16x16xf32>
    %41 = arith.mulf %39, %40 : vector<16x16xf32>
    %cst_24 = arith.constant -1.000000e+09 : f32
    %42 = vector.broadcast %cst_24 : f32 to vector<16x16xf32>
    %43 = arith.select %8, %42, %41 : vector<16x16xi1>, vector<16x16xf32>
    %cst_25 = arith.constant dense<0xFF800000> : vector<16xf32>
    %44 = vector.multi_reduction <maximumf>, %43, %cst_25 [1] : vector<16x16xf32> to vector<16xf32>
    %45 = vector.shape_cast %44 : vector<16xf32> to vector<16x1xf32>
    %46 = vector.broadcast %45 : vector<16x1xf32> to vector<16x16xf32>
    %47 = arith.subf %43, %46 : vector<16x16xf32>
    %48 = math.exp %47 : vector<16x16xf32>
    %cst_26 = arith.constant dense<0.000000e+00> : vector<16xf32>
    %49 = vector.multi_reduction <add>, %48, %cst_26 [1] : vector<16x16xf32> to vector<16xf32>
    %50 = vector.shape_cast %49 : vector<16xf32> to vector<16x1xf32>
    %51 = vector.broadcast %50 : vector<16x1xf32> to vector<16x16xf32>
    %52 = arith.divf %48, %51 : vector<16x16xf32>
    %c1 = arith.constant 1 : index
    %c0_27 = arith.constant 0 : index
    %c0_28 = arith.constant 0 : index
    %53 = vector.load %arg9[%c1, %c0_27, %c0_28] : memref<4x16x16xf32, #tpu.memory_space<vmem>>, vector<1x16x16xf32>
    %54 = vector.shape_cast %53 : vector<1x16x16xf32> to vector<16x16xf32>
    %55 = vector.shape_cast %52 : vector<16x16xf32> to vector<1x16x16xf32>
    tpu.vector_store %arg9[%c1, %c0_27, %c0_28], %55 {strides = array<i32>} : memref<4x16x16xf32, #tpu.memory_space<vmem>>, vector<1x16x16xf32>,
    %cst_29 = arith.constant dense<0.000000e+00> : vector<16x8xf32>
    %56 = tpu.matmul %52, %38, %cst_29 {dimension_numbers = #tpu.dot_dimension_numbers<[1], [0], [0], [1], [0, 0, 1, 1], [], []>} : vector<16x16xf32>, vector<16x8xf32>, vector<16x8xf32> -> vector<16x8xf32>
    %c8 = arith.constant 8 : index
    %c0_30 = arith.constant 0 : index
    %57 = vector.load %arg4[%c8, %c0_30] : memref<32x32xf32, #tpu.memory_space<vmem>>, vector<8x32xf32>
    %cst_31 = arith.constant dense<0.000000e+00> : vector<16x32xf32>
    %58 = tpu.matmul %56, %57, %cst_31 {dimension_numbers = #tpu.dot_dimension_numbers<[1], [0], [0], [1], [0, 0, 1, 1], [], []>} : vector<16x8xf32>, vector<8x32xf32>, vector<16x32xf32> -> vector<16x32xf32>
    %59 = arith.addf %35, %58 : vector<16x32xf32>
    %60 = vector.extract_strided_slice %5 {offsets = [0, 16], sizes = [16, 8], strides = [1, 1]} : vector<16x96xf32> to vector<16x8xf32>
    %61 = vector.extract_strided_slice %5 {offsets = [0, 48], sizes = [16, 8], strides = [1, 1]} : vector<16x96xf32> to vector<16x8xf32>
    %62 = vector.extract_strided_slice %5 {offsets = [0, 80], sizes = [16, 8], strides = [1, 1]} : vector<16x96xf32> to vector<16x8xf32>
    %cst_32 = arith.constant dense<0.000000e+00> : vector<16x16xf32>
    %63 = tpu.matmul %60, %61, %cst_32 {dimension_numbers = #tpu.dot_dimension_numbers<[1], [1], [0], [0], [0, 0, 1, 0], [], []>} : vector<16x8xf32>, vector<16x8xf32>, vector<16x16xf32> -> vector<16x16xf32>
    %cst_33 = arith.constant 0.353553385 : f32
    %64 = vector.broadcast %cst_33 : f32 to vector<16x16xf32>
    %65 = arith.mulf %63, %64 : vector<16x16xf32>
    %cst_34 = arith.constant -1.000000e+09 : f32
    %66 = vector.broadcast %cst_34 : f32 to vector<16x16xf32>
    %67 = arith.select %8, %66, %65 : vector<16x16xi1>, vector<16x16xf32>
    %cst_35 = arith.constant dense<0xFF800000> : vector<16xf32>
    %68 = vector.multi_reduction <maximumf>, %67, %cst_35 [1] : vector<16x16xf32> to vector<16xf32>
    %69 = vector.shape_cast %68 : vector<16xf32> to vector<16x1xf32>
    %70 = vector.broadcast %69 : vector<16x1xf32> to vector<16x16xf32>
    %71 = arith.subf %67, %70 : vector<16x16xf32>
    %72 = math.exp %71 : vector<16x16xf32>
    %cst_36 = arith.constant dense<0.000000e+00> : vector<16xf32>
    %73 = vector.multi_reduction <add>, %72, %cst_36 [1] : vector<16x16xf32> to vector<16xf32>
    %74 = vector.shape_cast %73 : vector<16xf32> to vector<16x1xf32>
    %75 = vector.broadcast %74 : vector<16x1xf32> to vector<16x16xf32>
    %76 = arith.divf %72, %75 : vector<16x16xf32>
    %c2 = arith.constant 2 : index
    %c0_37 = arith.constant 0 : index
    %c0_38 = arith.constant 0 : index
    %77 = vector.load %arg9[%c2, %c0_37, %c0_38] : memref<4x16x16xf32, #tpu.memory_space<vmem>>, vector<1x16x16xf32>
    %78 = vector.shape_cast %77 : vector<1x16x16xf32> to vector<16x16xf32>
    %79 = vector.shape_cast %76 : vector<16x16xf32> to vector<1x16x16xf32>
    tpu.vector_store %arg9[%c2, %c0_37, %c0_38], %79 {strides = array<i32>} : memref<4x16x16xf32, #tpu.memory_space<vmem>>, vector<1x16x16xf32>,
    %cst_39 = arith.constant dense<0.000000e+00> : vector<16x8xf32>
    %80 = tpu.matmul %76, %62, %cst_39 {dimension_numbers = #tpu.dot_dimension_numbers<[1], [0], [0], [1], [0, 0, 1, 1], [], []>} : vector<16x16xf32>, vector<16x8xf32>, vector<16x8xf32> -> vector<16x8xf32>
    %c16 = arith.constant 16 : index
    %c0_40 = arith.constant 0 : index
    %81 = vector.load %arg4[%c16, %c0_40] : memref<32x32xf32, #tpu.memory_space<vmem>>, vector<8x32xf32>
    %cst_41 = arith.constant dense<0.000000e+00> : vector<16x32xf32>
    %82 = tpu.matmul %80, %81, %cst_41 {dimension_numbers = #tpu.dot_dimension_numbers<[1], [0], [0], [1], [0, 0, 1, 1], [], []>} : vector<16x8xf32>, vector<8x32xf32>, vector<16x32xf32> -> vector<16x32xf32>
    %83 = arith.addf %59, %82 : vector<16x32xf32>
    %84 = vector.extract_strided_slice %5 {offsets = [0, 24], sizes = [16, 8], strides = [1, 1]} : vector<16x96xf32> to vector<16x8xf32>
    %85 = vector.extract_strided_slice %5 {offsets = [0, 56], sizes = [16, 8], strides = [1, 1]} : vector<16x96xf32> to vector<16x8xf32>
    %86 = vector.extract_strided_slice %5 {offsets = [0, 88], sizes = [16, 8], strides = [1, 1]} : vector<16x96xf32> to vector<16x8xf32>
    %cst_42 = arith.constant dense<0.000000e+00> : vector<16x16xf32>
    %87 = tpu.matmul %84, %85, %cst_42 {dimension_numbers = #tpu.dot_dimension_numbers<[1], [1], [0], [0], [0, 0, 1, 0], [], []>} : vector<16x8xf32>, vector<16x8xf32>, vector<16x16xf32> -> vector<16x16xf32>
    %cst_43 = arith.constant 0.353553385 : f32
    %88 = vector.broadcast %cst_43 : f32 to vector<16x16xf32>
    %89 = arith.mulf %87, %88 : vector<16x16xf32>
    %cst_44 = arith.constant -1.000000e+09 : f32
    %90 = vector.broadcast %cst_44 : f32 to vector<16x16xf32>
    %91 = arith.select %8, %90, %89 : vector<16x16xi1>, vector<16x16xf32>
    %cst_45 = arith.constant dense<0xFF800000> : vector<16xf32>
    %92 = vector.multi_reduction <maximumf>, %91, %cst_45 [1] : vector<16x16xf32> to vector<16xf32>
    %93 = vector.shape_cast %92 : vector<16xf32> to vector<16x1xf32>
    %94 = vector.broadcast %93 : vector<16x1xf32> to vector<16x16xf32>
    %95 = arith.subf %91, %94 : vector<16x16xf32>
    %96 = math.exp %95 : vector<16x16xf32>
    %cst_46 = arith.constant dense<0.000000e+00> : vector<16xf32>
    %97 = vector.multi_reduction <add>, %96, %cst_46 [1] : vector<16x16xf32> to vector<16xf32>
    %98 = vector.shape_cast %97 : vector<16xf32> to vector<16x1xf32>
    %99 = vector.broadcast %98 : vector<16x1xf32> to vector<16x16xf32>
    %100 = arith.divf %96, %99 : vector<16x16xf32>
    %c3 = arith.constant 3 : index
    %c0_47 = arith.constant 0 : index
    %c0_48 = arith.constant 0 : index
    %101 = vector.load %arg9[%c3, %c0_47, %c0_48] : memref<4x16x16xf32, #tpu.memory_space<vmem>>, vector<1x16x16xf32>
    %102 = vector.shape_cast %101 : vector<1x16x16xf32> to vector<16x16xf32>
    %103 = vector.shape_cast %100 : vector<16x16xf32> to vector<1x16x16xf32>
    tpu.vector_store %arg9[%c3, %c0_47, %c0_48], %103 {strides = array<i32>} : memref<4x16x16xf32, #tpu.memory_space<vmem>>, vector<1x16x16xf32>,
    %cst_49 = arith.constant dense<0.000000e+00> : vector<16x8xf32>
    %104 = tpu.matmul %100, %86, %cst_49 {dimension_numbers = #tpu.dot_dimension_numbers<[1], [0], [0], [1], [0, 0, 1, 1], [], []>} : vector<16x16xf32>, vector<16x8xf32>, vector<16x8xf32> -> vector<16x8xf32>
    %c24 = arith.constant 24 : index
    %c0_50 = arith.constant 0 : index
    %105 = vector.load %arg4[%c24, %c0_50] : memref<32x32xf32, #tpu.memory_space<vmem>>, vector<8x32xf32>
    %cst_51 = arith.constant dense<0.000000e+00> : vector<16x32xf32>
    %106 = tpu.matmul %104, %105, %cst_51 {dimension_numbers = #tpu.dot_dimension_numbers<[1], [0], [0], [1], [0, 0, 1, 1], [], []>} : vector<16x8xf32>, vector<8x32xf32>, vector<16x32xf32> -> vector<16x32xf32>
    %107 = arith.addf %83, %106 : vector<16x32xf32>
    %cst_52 = arith.constant dense<0.000000e+00> : vector<16xf32>
    %108 = vector.multi_reduction <add>, %107, %cst_52 [1] : vector<16x32xf32> to vector<16xf32>
    %109 = vector.shape_cast %108 : vector<16xf32> to vector<16x1xf32>
    %cst_53 = arith.constant 3.200000e+01 : f32
    %110 = vector.broadcast %cst_53 : f32 to vector<16x1xf32>
    %111 = arith.divf %109, %110 : vector<16x1xf32>
    %112 = vector.broadcast %111 : vector<16x1xf32> to vector<16x32xf32>
    %113 = arith.subf %107, %112 : vector<16x32xf32>
    %114 = arith.mulf %113, %113 : vector<16x32xf32>
    %cst_54 = arith.constant dense<0.000000e+00> : vector<16xf32>
    %115 = vector.multi_reduction <add>, %114, %cst_54 [1] : vector<16x32xf32> to vector<16xf32>
    %116 = vector.shape_cast %115 : vector<16xf32> to vector<16x1xf32>
    %cst_55 = arith.constant 3.200000e+01 : f32
    %117 = vector.broadcast %cst_55 : f32 to vector<16x1xf32>
    %118 = arith.divf %116, %117 : vector<16x1xf32>
    %119 = vector.broadcast %111 : vector<16x1xf32> to vector<16x32xf32>
    %120 = arith.subf %107, %119 : vector<16x32xf32>
    %cst_56 = arith.constant 9.99999974E-6 : f32
    %121 = vector.broadcast %cst_56 : f32 to vector<16x1xf32>
    %122 = arith.addf %118, %121 : vector<16x1xf32>
    %123 = math.rsqrt %122 : vector<16x1xf32>
    %124 = vector.broadcast %123 : vector<16x1xf32> to vector<16x32xf32>
    %125 = arith.mulf %120, %124 : vector<16x32xf32>
    %c0_57 = arith.constant 0 : index
    %c0_58 = arith.constant 0 : index
    %126 = vector.load %arg6[%c0_57, %c0_58] : memref<1x32xf32, #tpu.memory_space<vmem>>, vector<1x32xf32>
    %127 = vector.broadcast %126 : vector<1x32xf32> to vector<16x32xf32>
    %128 = arith.mulf %125, %127 : vector<16x32xf32>
    %c0_59 = arith.constant 0 : index
    %c0_60 = arith.constant 0 : index
    %129 = vector.load %arg7[%c0_59, %c0_60] : memref<1x32xf32, #tpu.memory_space<vmem>>, vector<1x32xf32>
    %130 = vector.broadcast %129 : vector<1x32xf32> to vector<16x32xf32>
    %131 = arith.addf %128, %130 : vector<16x32xf32>
    %c0_61 = arith.constant 0 : index
    %c0_62 = arith.constant 0 : index
    %132 = vector.load %arg8[%c0_61, %c0_62] : memref<16x32xf32, #tpu.memory_space<vmem>>, vector<16x32xf32>
    tpu.vector_store %arg8[%c0_61, %c0_62], %131 {strides = array<i32>} : memref<16x32xf32, #tpu.memory_space<vmem>>, vector<16x32xf32>,
    return
  }
}

</mosaic_0001>

<bundles_post_ra>
// kernel: multi_head_attention.1
= control target key start
LH: loop header
LB: loop body
LE: loop exit
PB: predicated region body
PF: predicated region fallthrough
CT: control target
= control target key end

     0   :  { %s1242_s0 = inlined_call_operand.vmem [shape: f32[16,32], index: 0, kind: input, shape index: {}]   ;;  %s1243_s1 = inlined_call_operand.vmem [shape: f32[16,16], index: 1, kind: input, shape index: {}]   ;;  %s1244_s2 = inlined_call_operand.vmem [shape: f32[32,96], index: 2, kind: input, shape index: {}]   ;;  %s1245_s3 = inlined_call_operand.vmem [shape: f32[1,96], index: 3, kind: input, shape index: {}]   ;;  %s1246_s4 = inlined_call_operand.vmem [shape: f32[32,32], index: 4, kind: input, shape index: {}]   ;;  %s1247_s5 = inlined_call_operand.vmem [shape: f32[1,32], index: 5, kind: input, shape index: {}]   ;;  %s1248_s6 = inlined_call_operand.vmem [shape: f32[1,32], index: 6, kind: input, shape index: {}]   ;;  %s1249_s7 = inlined_call_operand.vmem [shape: f32[1,32], index: 7, kind: input, shape index: {}]   ;;  %s1250_s8 = inlined_call_operand.hbm [shape: f32[16,32], index: 8, kind: output, shape index: {0}]   ;;  %s1251_s9 = inlined_call_operand.vmem [shape: f32[4,16,16], index: 9, kind: output, shape index: {1}]  }
   0x1   :  { %v37_v0 = vld [vmem:[%s1244_s2 + $0x18] sm:$0xff]  ;;  %v36_v1 = vld [vmem:[%s1244_s2 + $0x10] sm:$0xff]  ;;  %v35_v2 = vld [vmem:[%s1244_s2 + $0x8] sm:$0xff] }
   0x2   :  { %61 = vmatpush.msra.mxu0 %v37_v0 }
   0x4   :  { %62 = vmatpush.msra.mxu0 %v36_v1 }
   0x5   :  { %15 = vsyncpa [#allocation3], 0  ;;  %v34_v3 = vld [vmem:[%s1244_s2] sm:$0xff]  ;;  %vm42_vm0 = vcmask 261120   ;;  %v1043_v5 = vld [vmem:[%s1242_s0 + $0x8] sm:$0xff]  ;;  %s956_s22 = smov 96  }
   0x6   :  { %63 = vmatpush.msra.mxu0 %v35_v2  ;;  %v1036_v4 = vld [vmem:[%s1242_s0] sm:$0xff]  ;;  %s957_s0 = smov 64   ;;  %s958_s23 = smov 120   ;;  %vm88_vm1 = vcmask 64512   ;;  %vm124_vm3 = vcmask 130048   ;;  %v1081_v22 = vld [vmem:[%s1243_s1 + $0x8] sm:$0xff] }
   0x7   :  { %v888_v7 = vld [vmem:[%s1245_s3] ss:$0 sm:$0xff]  ;;  %vm75_vm4 = vcmp.gt.f32.partialorder %v1081_v22, 0.5  ;;  %s959_s27 = smov 88   ;;  %s960_s12 = smov 56  }
   0x8   :  { %64 = vmatpush.msra.mxu0 %v34_v3  ;;  %v1072_v17 = vld [vmem:[%s1243_s1] sm:$0xff]  ;;  %s961_s13 = smov 112   ;;  %s962_s14 = smov 72  }
   0x9   :  { %812 = vmatmul.msk.f32.vlgmr.msra.gmra.mxu0 %vm42_vm0, %v1036_v4  ;;  %vm74_vm2 = vcmp.gt.f32.partialorder %v1072_v17, 0.5  ;;  %v210_v27 = vld [vmem:[%s1246_s4] sm:$0xff]  ;;  %s963_s15 = smov 104   ;;  %s964_s16 = smov 80  }
   0xa   :  { %852 = vmatpush.msra.mxu3 %v210_v27  ;;  %s966_s26 = smov 40   ;;  %s796_s18 = sshll.u32 %s1250_s8, 4  ;;  %s797_s18 = int_to_ptr.hbm [resolvable:$true] %s796_s18 }
   0xb   :  { %s970_s19 = smov 8  }
  0x11   :  { %813 = vmatmul.msk.f32.gmra.mxu0 %vm42_vm0, %v1043_v5 }
  0x86   :  { %v66_v6 = vpop.f32.mrf.mxu0 }
  0x87   :  { %v1053_v10 = vadd.f32 %v888_v7, %v66_v6 }
  0x8e   :  { %v69_v8 = vpop.f32.mrf.mxu0 }
  0x8f   :  { %v1050_v9 = vadd.f32 %v888_v7, %v69_v8 }
  0x91   :  { %86 = vrot.lane.b32.xlu0 %v1050_v9, %s956_s22  ;;  %v1058_v11 = vpack.i.bf16 %v1053_v10, %v1050_v9 }
  0x99   :  { %84 = vrot.lane.b32.xlu0 %v1053_v10, %s956_s22 }
  0xa1   :  { %869 = vrot.lane.b32.xlu0 %v1058_v11, %s957_s0 }
  0xa9   :  { %242 = vrot.lane.b32.xlu0 %v1053_v10, %s958_s23 }
  0xb1   :  { %244 = vrot.lane.b32.xlu0 %v1050_v9, %s958_s23 }
 0x103   :  { %v87_v12 = vpop.permute.xlu0 %86 }
 0x104   :  { %814 = vmatpush.xpose.msk.msra.mxu1 %vm88_vm1, %v87_v12 }
 0x10b   :  { %v85_v13 = vpop.permute.xlu0 %84 }
 0x10c   :  { %815 = vmatpush.xpose.msk.msra.mxu1 %vm88_vm1, %v85_v13 }
 0x10f   :  { %816 = vmatmul.msk.f32.vlgmr.msra.gmra.mxu1 %vm88_vm1, %v1053_v10 }
 0x113   :  { %v870_v14 = vpop.permute.xlu0 %869 }
 0x114   :  { %v871_v15 = vunpack.i.l.bf16 %v870_v14  ;;  %v872_v16 = vunpack.i.h.bf16 %v870_v14 }
 0x116   :  { %201 = vmatpush.msra.mxu2 %v871_v15 }
 0x117   :  { %817 = vmatmul.msk.f32.gmra.mxu1 %vm88_vm1, %v1050_v9 }
 0x118   :  { %202 = vmatpush.msra.mxu2 %v872_v16 }
 0x11a   :  { %232 = vmatpush.msrb.mxu2 %v210_v27 }
 0x11b   :  { %v243_v2 = vpop.permute.xlu0 %242 }
 0x123   :  { %v245_v3 = vpop.permute.xlu0 %244 }
 0x18c   :  { %v114_v18 = vpop.f32.mrf.mxu1 }
 0x18d   :  { %v120_v19 = vmul.f32 0.35355338, %v114_v18 }
 0x18f   :  { %v122_v20 = vsel %vm74_vm2, -1e+09, %v120_v19 }
 0x190   :  { %v125_v21 = vsel %vm124_vm3, %v122_v20, -inf }
 0x191   :  { %126 = vmax.xlane.f32.xlu1 %v125_v21 }
 0x194   :  { %v117_v23 = vpop.f32.mrf.mxu1 }
 0x195   :  { %v121_v24 = vmul.f32 0.35355338, %v117_v23 }
 0x197   :  { %v123_v25 = vsel %vm75_vm4, -1e+09, %v121_v24 }
 0x198   :  { %v128_v26 = vsel %vm124_vm3, %v123_v25, -inf }
 0x199   :  { %129 = vmax.xlane.f32.xlu1 %v128_v26 }
 0x1b2   :  { %248 = vrot.lane.b32.xlu1 %v1050_v9, %s959_s27 }
 0x204   :  { %v127_v28 = vpop.xlane.xlu1 %126 }
 0x205   :  { %v131_v29 = vsub.f32 %v122_v20, %v127_v28 }
 0x207   :  { %v133_v30 = vmul.f32 1.442695, %v131_v29 }
 0x209   :  { %892 = vpow2.f32 %v133_v30 }
 0x20c   :  { %v130_v31 = vpop.xlane.xlu1 %129 }
 0x20d   :  { %v132_v32 = vsub.f32 %v123_v25, %v130_v31 }
 0x20f   :  { %v893_v33 = vpop.eup %892  ;;  %v135_v34 = vmul.f32 1.442695, %v132_v32 }
 0x210   :  { %v137_v35 = vsel %vm124_vm3, %v893_v33, 0.0 }
 0x211   :  { %894 = vpow2.f32 %v135_v34  ;;  %138 = vadd.xlane.f32.xlu2 %v137_v35 }
 0x217   :  { %v895_v36 = vpop.eup %894 }
 0x218   :  { %v140_v37 = vsel %vm124_vm3, %v895_v36, 0.0 }
 0x219   :  { %141 = vadd.xlane.f32.xlu2 %v140_v37 }
 0x224   :  { %v249_v38 = vpop.permute.xlu1 %248 }
 0x225   :  { %822 = vmatpush.xpose.msk.msrb.mxu3 %vm88_vm1, %v249_v38 }
 0x231   :  { %246 = vrot.lane.b32.xlu2 %v1053_v10, %s959_s27 }
 0x284   :  { %v139_v39 = vpop.xlane.xlu2 %138 }
 0x285   :  { %896 = vrcp.f32 %v139_v39  ;;  %v154_v44 = vand.u32 2147483648, %v139_v39  ;;  %v152_v46 = vand.u32 2147483647, %v139_v39  ;;  %vm148_vm6 = vweird.f32 %v139_v39 }
 0x287   :  { %v155_v49 = vor.u32 1.1754944e-38, %v154_v44  ;;  %vm153_vm8 = vcmp.eq.f32.partialorder %v152_v46, 8.507059e+37 }
 0x28b   :  { %v897_v40 = vpop.eup %896 }
 0x28c   :  { %v144_v41 = vmul.f32 %v897_v40, %v139_v39  ;;  %v142_v42 = vpop.xlane.xlu2 %141  ;;  %vm149_vm5 = vweird.f32 %v897_v40 }
 0x28d   :  { %898 = vrcp.f32 %v142_v42  ;;  %vm150_vm7 = vmor %vm148_vm6, %vm149_vm5  ;;  %v169_v56 = vand.u32 2147483648, %v142_v42  ;;  %v167_v58 = vand.u32 2147483647, %v142_v42  ;;  %vm163_vm10 = vweird.f32 %v142_v42 }
 0x28e   :  { %v145_v43 = vsub.f32 1.0, %v144_v41 }
 0x28f   :  { %v170_v60 = vor.u32 1.1754944e-38, %v169_v56  ;;  %vm168_vm12 = vcmp.eq.f32.partialorder %v167_v58, 8.507059e+37 }
 0x290   :  { %v146_v45 = vmul.f32 %v897_v40, %v145_v43 }
 0x292   :  { %v147_v47 = vadd.f32 %v897_v40, %v146_v45 }
 0x293   :  { %v899_v48 = vpop.eup %898 }
 0x294   :  { %v159_v50 = vmul.f32 %v899_v48, %v142_v42  ;;  %v247_v51 = vpop.permute.xlu2 %246  ;;  %v151_v52 = vsel %vm150_vm7, %v897_v40, %v147_v47  ;;  %vm164_vm9 = vweird.f32 %v899_v48 }
 0x295   :  { %823 = vmatpush.xpose.msk.msrb.mxu3 %vm88_vm1, %v247_v51  ;;  %v156_v53 = vsel %vm153_vm8, %v155_v49, %v151_v52  ;;  %vm165_vm11 = vmor %vm163_vm10, %vm164_vm9 }
 0x296   :  { %v160_v54 = vsub.f32 1.0, %v159_v50  ;;  %v157_v55 = vmul.f32 %v893_v33, %v156_v53  ;;  %v371_v33 = vld [vmem:[%s1246_s4 + $0x8] sm:$0xff] }
 0x297   :  { %393 = vmatpush.msrb.mxu0 %v371_v33 }
 0x298   :  { %v161_v57 = vmul.f32 %v899_v48, %v160_v54  ;;  %173 = vst.msk [vmem:[%s1251_s9] sm:$0xff] %vm124_vm3, %v157_v55  ;;  %818 = vmatmul.msk.f32.vlgmr.msra.gmra.mxu2 %vm124_vm3, %v157_v55 }
 0x29a   :  { %v162_v59 = vadd.f32 %v899_v48, %v161_v57 }
 0x29c   :  { %v166_v61 = vsel %vm165_vm11, %v899_v48, %v162_v59 }
 0x29d   :  { %v171_v62 = vsel %vm168_vm12, %v170_v60, %v166_v61 }
 0x29e   :  { %v172_v63 = vmul.f32 %v895_v36, %v171_v62 }
 0x2a0   :  { %174 = vst.msk [vmem:[%s1251_s9 + $0x8] sm:$0xff] %vm124_vm3, %v172_v63  ;;  %819 = vmatmul.msk.f32.gmra.mxu2 %vm124_vm3, %v172_v63 }
 0x31b   :  { %v204_v0 = vpop.f32.mrf.mxu2 }
 0x31c   :  { %820 = vmatmul.msk.f32.vlgmr.msrb.gmra.mxu2 %vm88_vm1, %v204_v0 }
 0x323   :  { %v207_v1 = vpop.f32.mrf.mxu2 }
 0x324   :  { %821 = vmatmul.msk.f32.vlgmr.msra.gmra.mxu3 %vm88_vm1, %v207_v1 }
 0x32c   :  { %824 = vmatmul.msk.f32.vlgmr.msrb.gmra.mxu3 %vm88_vm1, %v243_v2 }
 0x334   :  { %825 = vmatmul.msk.f32.gmra.mxu3 %vm88_vm1, %v245_v3 }
 0x39f   :  { %v1148_v62 = vpop.f32.mrf.mxu2 }
 0x3a7   :  { %v1110_v6 = vpop.f32.mrf.mxu3 }
 0x3af   :  { %v275_v7 = vpop.f32.mrf.mxu3 }
 0x3b0   :  { %v281_v8 = vmul.f32 0.35355338, %v275_v7 }
 0x3b2   :  { %v283_v12 = vsel %vm74_vm2, -1e+09, %v281_v8 }
 0x3b3   :  { %v285_v13 = vsel %vm124_vm3, %v283_v12, -inf }
 0x3b4   :  { %286 = vmax.xlane.f32.xlu0 %v285_v13 }
 0x3b7   :  { %v278_v14 = vpop.f32.mrf.mxu3 }
 0x3b8   :  { %v282_v15 = vmul.f32 0.35355338, %v278_v14 }
 0x3ba   :  { %v284_v16 = vsel %vm75_vm4, -1e+09, %v282_v15 }
 0x3bb   :  { %v288_v18 = vsel %vm124_vm3, %v284_v16, -inf }
 0x3bc   :  { %289 = vmax.xlane.f32.xlu2 %v288_v18 }
 0x3c8   :  { %874 = vrot.lane.b32.xlu0 %v1058_v11, %s960_s12 }
 0x3d0   :  { %403 = vrot.lane.b32.xlu0 %v1053_v10, %s961_s13 }
 0x3d8   :  { %568 = vrot.lane.b32.xlu0 %v1053_v10, %s962_s14 }
 0x3e0   :  { %566 = vrot.lane.b32.xlu0 %v1050_v9, %s963_s15 }
 0x427   :  { %v287_v19 = vpop.xlane.xlu0 %286 }
 0x428   :  { %v291_v20 = vsub.f32 %v283_v12, %v287_v19 }
 0x42a   :  { %v293_v21 = vmul.f32 1.442695, %v291_v20  ;;  %v1165_v20 = vld [vmem:[%s1247_s5] ss:$0 sm:$0xff]  ;;  %s965_s5 = smov 48  }
 0x42c   :  { %900 = vpow2.f32 %v293_v21 }
 0x42f   :  { %v290_v23 = vpop.xlane.xlu2 %289 }
 0x430   :  { %v292_v24 = vsub.f32 %v284_v16, %v290_v23  ;;  %v81_v23 = vadd.f32 %v1165_v20, %v1043_v5 }
 0x432   :  { %v901_v25 = vpop.eup %900  ;;  %v295_v26 = vmul.f32 1.442695, %v292_v24 }
 0x433   :  { %v297_v27 = vsel %vm124_vm3, %v901_v25, 0.0 }
 0x434   :  { %902 = vpow2.f32 %v295_v26  ;;  %298 = vadd.xlane.f32.xlu1 %v297_v27 }
 0x43a   :  { %v903_v28 = vpop.eup %902  ;;  %v875_v29 = vpop.permute.xlu0 %874 }
 0x43b   :  { %v876_v30 = vunpack.i.l.bf16 %v875_v29  ;;  %v300_v31 = vsel %vm124_vm3, %v903_v28, 0.0  ;;  %v877_v32 = vunpack.i.h.bf16 %v875_v29 }
 0x43c   :  { %301 = vadd.xlane.f32.xlu2 %v300_v31 }
 0x43d   :  { %362 = vmatpush.msra.mxu2 %v876_v30 }
 0x43f   :  { %363 = vmatpush.msra.mxu2 %v877_v32 }
 0x442   :  { %v404_v56 = vpop.permute.xlu0 %403 }
 0x44a   :  { %v569_v60 = vpop.permute.xlu0 %568 }
 0x44d   :  { %409 = vrot.lane.b32.xlu1 %v1050_v9, %s964_s16 }
 0x452   :  { %v567_v16 = vpop.permute.xlu0 %566 }
 0x454   :  { %407 = vrot.lane.b32.xlu2 %v1053_v10, %s964_s16 }
 0x455   :  { %570 = vrot.lane.b32.xlu1 %v1050_v9, %s962_s14 }
 0x45c   :  { %405 = vrot.lane.b32.xlu2 %v1050_v9, %s961_s13 }
 0x45d   :  { %564 = vrot.lane.b32.xlu1 %v1053_v10, %s963_s15 }
 0x4a7   :  { %v299_v34 = vpop.xlane.xlu1 %298 }
 0x4a8   :  { %904 = vrcp.f32 %v299_v34  ;;  %v314_v39 = vand.u32 2147483648, %v299_v34  ;;  %v312_v41 = vand.u32 2147483647, %v299_v34  ;;  %vm308_vm14 = vweird.f32 %v299_v34 }
 0x4aa   :  { %v315_v10 = vor.u32 1.1754944e-38, %v314_v39  ;;  %vm313_vm5 = vcmp.eq.f32.partialorder %v312_v41, 8.507059e+37 }
 0x4ae   :  { %v905_v35 = vpop.eup %904 }
 0x4af   :  { %v304_v36 = vmul.f32 %v905_v35, %v299_v34  ;;  %v302_v37 = vpop.xlane.xlu2 %301  ;;  %vm309_vm13 = vweird.f32 %v905_v35 }
 0x4b0   :  { %906 = vrcp.f32 %v302_v37  ;;  %vm310_vm15 = vmor %vm308_vm14, %vm309_vm13  ;;  %v329_v48 = vand.u32 2147483648, %v302_v37  ;;  %v327_v50 = vand.u32 2147483647, %v302_v37  ;;  %vm323_vm7 = vweird.f32 %v302_v37 }
 0x4b1   :  { %v305_v38 = vsub.f32 1.0, %v304_v36 }
 0x4b2   :  { %v330_v52 = vor.u32 1.1754944e-38, %v329_v48  ;;  %vm328_vm9 = vcmp.eq.f32.partialorder %v327_v50, 8.507059e+37 }
 0x4b3   :  { %v306_v40 = vmul.f32 %v905_v35, %v305_v38 }
 0x4b5   :  { %v307_v42 = vadd.f32 %v905_v35, %v306_v40 }
 0x4b6   :  { %v907_v9 = vpop.eup %906 }
 0x4b7   :  { %v311_v43 = vsel %vm310_vm15, %v905_v35, %v307_v42  ;;  %v319_v44 = vmul.f32 %v907_v9, %v302_v37  ;;  %vm324_vm6 = vweird.f32 %v907_v9  ;;  %v408_v58 = vpop.permute.xlu2 %407 }
 0x4b8   :  { %v316_v45 = vsel %vm313_vm5, %v315_v10, %v311_v43  ;;  %vm325_vm8 = vmor %vm323_vm7, %vm324_vm6 }
 0x4b9   :  { %v320_v46 = vsub.f32 1.0, %v319_v44  ;;  %v317_v47 = vmul.f32 %v901_v25, %v316_v45  ;;  %v241_v25 = vadd.f32 %v1110_v6, %v81_v23 }
 0x4bb   :  { %v321_v49 = vmul.f32 %v907_v9, %v320_v46  ;;  %826 = vst.msk [vmem:[%s1251_s9 + $0x10] sm:$0xff] %vm124_vm3, %v317_v47  ;;  %828 = vmatmul.msk.f32.vlgmr.msra.gmra.mxu2 %vm124_vm3, %v317_v47 }
 0x4bd   :  { %v322_v51 = vadd.f32 %v907_v9, %v321_v49 }
 0x4bf   :  { %v410_v53 = vpop.permute.xlu1 %409  ;;  %v326_v54 = vsel %vm325_vm8, %v907_v9, %v322_v51  ;;  %v406_v61 = vpop.permute.xlu2 %405 }
 0x4c0   :  { %832 = vmatpush.xpose.msk.msrb.mxu1 %vm88_vm1, %v410_v53  ;;  %v331_v55 = vsel %vm328_vm9, %v330_v52, %v326_v54 }
 0x4c1   :  { %v332_v57 = vmul.f32 %v903_v28, %v331_v55 }
 0x4c3   :  { %827 = vst.msk [vmem:[%s1251_s9 + $0x18] sm:$0xff] %vm124_vm3, %v332_v57  ;;  %829 = vmatmul.msk.f32.gmra.mxu2 %vm124_vm3, %v332_v57 }
 0x4c4   :  { %833 = vmatpush.xpose.msk.msrb.mxu1 %vm88_vm1, %v408_v58 }
 0x4c7   :  { %v571_v59 = vpop.permute.xlu1 %570  ;;  %834 = vmatmul.msk.f32.vlgmr.msrb.gmra.mxu1 %vm88_vm1, %v404_v56 }
 0x4c8   :  { %842 = vmatpush.xpose.msk.msra.mxu0 %vm88_vm1, %v571_v59 }
 0x4cc   :  { %843 = vmatpush.xpose.msk.msra.mxu0 %vm88_vm1, %v569_v60 }
 0x4cf   :  { %835 = vmatmul.msk.f32.gmra.mxu1 %vm88_vm1, %v406_v61  ;;  %v565_v13 = vpop.permute.xlu1 %564 }
 0x53e   :  { %v365_v63 = vpop.f32.mrf.mxu2 }
 0x53f   :  { %830 = vmatmul.msk.f32.vlgmr.msrb.gmra.mxu0 %vm88_vm1, %v365_v63 }
 0x544   :  { %v436_v0 = vpop.f32.mrf.mxu1 }
 0x545   :  { %v442_v1 = vmul.f32 0.35355338, %v436_v0 }
 0x546   :  { %v368_v2 = vpop.f32.mrf.mxu2 }
 0x547   :  { %831 = vmatmul.msk.f32.gmra.mxu0 %vm88_vm1, %v368_v2  ;;  %v444_v3 = vsel %vm74_vm2, -1e+09, %v442_v1 }
 0x548   :  { %v446_v7 = vsel %vm124_vm3, %v444_v3, -inf }
 0x549   :  { %447 = vmax.xlane.f32.xlu2 %v446_v7 }
 0x54c   :  { %v439_v8 = vpop.f32.mrf.mxu1 }
 0x54d   :  { %v443_v12 = vmul.f32 0.35355338, %v439_v8 }
 0x54f   :  { %844 = vmatmul.msk.f32.vlgmr.msra.gmra.mxu0 %vm88_vm1, %v565_v13  ;;  %v445_v14 = vsel %vm75_vm4, -1e+09, %v443_v12 }
 0x550   :  { %v449_v15 = vsel %vm124_vm3, %v445_v14, -inf }
 0x551   :  { %450 = vmax.xlane.f32.xlu1 %v449_v15 }
 0x557   :  { %845 = vmatmul.msk.f32.gmra.mxu0 %vm88_vm1, %v567_v16 }
 0x5bc   :  { %v448_v18 = vpop.xlane.xlu2 %447  ;;  %v1160_v19 = vpop.f32.mrf.mxu0 }
 0x5bd   :  { %v452_v21 = vsub.f32 %v444_v3, %v448_v18 }
 0x5bf   :  { %v454_v24 = vmul.f32 1.442695, %v452_v21  ;;  %v532_v21 = vld [vmem:[%s1246_s4 + $0x10] sm:$0xff] }
 0x5c0   :  { %554 = vmatpush.msrb.mxu2 %v532_v21 }
 0x5c1   :  { %908 = vpow2.f32 %v454_v24 }
 0x5c4   :  { %v451_v26 = vpop.xlane.xlu1 %450  ;;  %v398_v27 = vpop.f32.mrf.mxu0 }
 0x5c5   :  { %v1170_v28 = vadd.f32 %v398_v27, %v241_v25  ;;  %v453_v30 = vsub.f32 %v445_v14, %v451_v26 }
 0x5c7   :  { %v909_v29 = vpop.eup %908  ;;  %v456_v32 = vmul.f32 1.442695, %v453_v30 }
 0x5c8   :  { %v458_v31 = vsel %vm124_vm3, %v909_v29, 0.0 }
 0x5c9   :  { %459 = vadd.xlane.f32.xlu1 %v458_v31  ;;  %910 = vpow2.f32 %v456_v32 }
 0x5cc   :  { %v597_v33 = vpop.f32.mrf.mxu0 }
 0x5cd   :  { %v603_v34 = vmul.f32 0.35355338, %v597_v33  ;;  %v693_v33 = vld [vmem:[%s1246_s4 + $0x18] sm:$0xff] }
 0x5cf   :  { %v605_v5 = vsel %vm74_vm2, -1e+09, %v603_v34  ;;  %v911_v36 = vpop.eup %910 }
 0x5d0   :  { %v607_v35 = vsel %vm124_vm3, %v605_v5, -inf  ;;  %v461_v39 = vsel %vm124_vm3, %v911_v36, 0.0 }
 0x5d1   :  { %608 = vmax.xlane.f32.xlu0 %v607_v35 }
 0x5d4   :  { %v600_v6 = vpop.f32.mrf.mxu0 }
 0x5d5   :  { %v604_v37 = vmul.f32 0.35355338, %v600_v6 }
 0x5d7   :  { %v606_v38 = vsel %vm75_vm4, -1e+09, %v604_v37 }
 0x5d8   :  { %v610_v40 = vsel %vm124_vm3, %v606_v38, -inf }
 0x5d9   :  { %462 = vadd.xlane.f32.xlu0 %v461_v39  ;;  %611 = vmax.xlane.f32.xlu2 %v610_v40 }
 0x5ed   :  { %879 = vrot.lane.b32.xlu0 %v1058_v11, %s965_s5 }
 0x63c   :  { %v460_v17 = vpop.xlane.xlu1 %459 }
 0x63d   :  { %912 = vrcp.f32 %v460_v17  ;;  %v475_v44 = vand.u32 2147483648, %v460_v17  ;;  %v473_v46 = vand.u32 2147483647, %v460_v17  ;;  %vm469_vm4 = vweird.f32 %v460_v17 }
 0x63f   :  { %v476_v48 = vor.u32 1.1754944e-38, %v475_v44  ;;  %vm474_vm11 = vcmp.eq.f32.partialorder %v473_v46, 8.507059e+37 }
 0x643   :  { %v913_v41 = vpop.eup %912 }
 0x644   :  { %v465_v42 = vmul.f32 %v913_v41, %v460_v17  ;;  %v609_v9 = vpop.xlane.xlu0 %608  ;;  %vm470_vm2 = vweird.f32 %v913_v41 }
 0x645   :  { %v613_v10 = vsub.f32 %v605_v5, %v609_v9  ;;  %vm471_vm10 = vmor %vm469_vm4, %vm470_vm2 }
 0x646   :  { %v466_v43 = vsub.f32 1.0, %v465_v42 }
 0x647   :  { %v615_v45 = vmul.f32 1.442695, %v613_v10 }
 0x648   :  { %v467_v22 = vmul.f32 %v913_v41, %v466_v43 }
 0x649   :  { %914 = vpow2.f32 %v615_v45 }
 0x64a   :  { %v468_v47 = vadd.f32 %v913_v41, %v467_v22 }
 0x64c   :  { %v472_v49 = vsel %vm471_vm10, %v913_v41, %v468_v47  ;;  %v463_v50 = vpop.xlane.xlu0 %462  ;;  %v612_v51 = vpop.xlane.xlu2 %611 }
 0x64d   :  { %v477_v52 = vsel %vm474_vm11, %v476_v48, %v472_v49  ;;  %916 = vrcp.f32 %v463_v50  ;;  %v614_v53 = vsub.f32 %v606_v38, %v612_v51  ;;  %v490_v61 = vand.u32 2147483648, %v463_v50 }
 0x64e   :  { %v478_v54 = vmul.f32 %v909_v29, %v477_v52  ;;  %v488_v1 = vand.u32 2147483647, %v463_v50  ;;  %vm484_vm13 = vweird.f32 %v463_v50  ;;  %v80_v48 = vadd.f32 %v1165_v20, %v1036_v4 }
 0x64f   :  { %v1181_v55 = vpop.eup %914  ;;  %v617_v56 = vmul.f32 1.442695, %v614_v53  ;;  %v491_v7 = vor.u32 1.1754944e-38, %v490_v61  ;;  %v967_v4 = vmov 32.0  }
 0x650   :  { %v619_v57 = vsel %vm124_vm3, %v1181_v55, 0.0  ;;  %836 = vst.msk [vmem:[%s1251_s9 + $0x20] sm:$0xff] %vm124_vm3, %v478_v54  ;;  %vm489_vm15 = vcmp.eq.f32.partialorder %v488_v1, 8.507059e+37  ;;  %v240_v49 = vadd.f32 %v1148_v62, %v80_v48 }
 0x651   :  { %620 = vadd.xlane.f32.xlu2 %v619_v57  ;;  %918 = vpow2.f32 %v617_v56 }
 0x652   :  { %v401_v51 = vadd.f32 %v1160_v19, %v240_v49 }
 0x653   :  { %v917_v58 = vpop.eup %916 }
 0x654   :  { %v480_v59 = vmul.f32 %v917_v58, %v463_v50  ;;  %vm485_vm12 = vweird.f32 %v917_v58 }
 0x655   :  { %vm486_vm14 = vmor %vm484_vm13, %vm485_vm12 }
 0x656   :  { %v481_v60 = vsub.f32 1.0, %v480_v59 }
 0x657   :  { %v1189_v63 = vpop.eup %918 }
 0x658   :  { %v482_v0 = vmul.f32 %v917_v58, %v481_v60  ;;  %v622_v2 = vsel %vm124_vm3, %v1189_v63, 0.0 }
 0x659   :  { %623 = vadd.xlane.f32.xlu1 %v622_v2 }
 0x65a   :  { %v483_v3 = vadd.f32 %v917_v58, %v482_v0 }
 0x65c   :  { %v487_v8 = vsel %vm486_vm14, %v917_v58, %v483_v3 }
 0x65d   :  { %v492_v12 = vsel %vm489_vm15, %v491_v7, %v487_v8 }
 0x65e   :  { %v493_v13 = vmul.f32 %v911_v36, %v492_v12 }
 0x65f   :  { %v880_v14 = vpop.permute.xlu0 %879 }
 0x660   :  { %v881_v15 = vunpack.i.l.bf16 %v880_v14  ;;  %837 = vst.msk [vmem:[%s1251_s9 + $0x28] sm:$0xff] %vm124_vm3, %v493_v13  ;;  %v882_v16 = vunpack.i.h.bf16 %v880_v14 }
 0x662   :  { %523 = vmatpush.msra.mxu3 %v881_v15 }
 0x664   :  { %524 = vmatpush.msra.mxu3 %v882_v16 }
 0x665   :  { %838 = vmatmul.msk.f32.vlgmr.msra.gmra.mxu3 %vm124_vm3, %v478_v54 }
 0x666   :  { %715 = vmatpush.msrb.mxu3 %v693_v33  ;;  %v890_v33 = vld [vmem:[%s1248_s6] ss:$0 sm:$0xff]  ;;  %s968_s6 = smov [#allocation2]  }
 0x667   :  { %s794_s15 = sshll.u32 %s968_s6, 4  ;;  %s795_s15 = int_to_ptr.vmem [resolvable:$true] %s794_s15 }
 0x669   :  { %884 = vrot.lane.b32.xlu2 %v1058_v11, %s966_s26 }
 0x66d   :  { %839 = vmatmul.msk.f32.gmra.mxu3 %vm124_vm3, %v493_v13 }
 0x6c4   :  { %v621_v18 = vpop.xlane.xlu2 %620 }
 0x6c5   :  { %920 = vrcp.f32 %v621_v18  ;;  %v636_v30 = vand.u32 2147483648, %v621_v18  ;;  %v634_v32 = vand.u32 2147483647, %v621_v18  ;;  %vm630_vm6 = vweird.f32 %v621_v18 }
 0x6c7   :  { %v637_v5 = vor.u32 1.1754944e-38, %v636_v30  ;;  %vm635_vm8 = vcmp.eq.f32.partialorder %v634_v32, 8.507059e+37 }
 0x6cb   :  { %v921_v23 = vpop.eup %920 }
 0x6cc   :  { %v626_v24 = vmul.f32 %v921_v23, %v621_v18  ;;  %v885_v25 = vpop.permute.xlu2 %884  ;;  %v624_v26 = vpop.xlane.xlu1 %623  ;;  %vm631_vm5 = vweird.f32 %v921_v23 }
 0x6cd   :  { %v886_v27 = vunpack.i.l.bf16 %v885_v25  ;;  %922 = vrcp.f32 %v624_v26  ;;  %v887_v31 = vunpack.i.h.bf16 %v885_v25  ;;  %vm632_vm7 = vmor %vm630_vm6, %vm631_vm5  ;;  %v651_v40 = vand.u32 2147483648, %v624_v26 }
 0x6ce   :  { %v627_v29 = vsub.f32 1.0, %v626_v24  ;;  %v649_v41 = vand.u32 2147483647, %v624_v26  ;;  %vm645_vm2 = vweird.f32 %v624_v26  ;;  %924 = vrcp.f32 %v967_v4 }
 0x6cf   :  { %684 = vmatpush.msra.mxu1 %v886_v27  ;;  %v652_v9 = vor.u32 1.1754944e-38, %v651_v40 }
 0x6d0   :  { %v628_v11 = vmul.f32 %v921_v23, %v627_v29  ;;  %vm650_vm10 = vcmp.eq.f32.partialorder %v649_v41, 8.507059e+37 }
 0x6d1   :  { %685 = vmatpush.msra.mxu1 %v887_v31 }
 0x6d2   :  { %v629_v34 = vadd.f32 %v921_v23, %v628_v11 }
 0x6d3   :  { %v923_v35 = vpop.eup %922 }
 0x6d4   :  { %v633_v6 = vsel %vm632_vm7, %v921_v23, %v629_v34  ;;  %v641_v37 = vmul.f32 %v923_v35, %v624_v26  ;;  %vm646_vm9 = vweird.f32 %v923_v35  ;;  %v925_v62 = vpop.eup %924 }
 0x6d5   :  { %v638_v36 = vsel %vm635_vm8, %v637_v5, %v633_v6  ;;  %vm647_vm4 = vmor %vm645_vm2, %vm646_vm9  ;;  %v732_v20 = vmul.f32 32.0, %v925_v62 }
 0x6d6   :  { %v639_v38 = vmul.f32 %v1181_v55, %v638_v36  ;;  %v642_v39 = vsub.f32 1.0, %v641_v37  ;;  %v891_v36 = vld [vmem:[%s1249_s7] ss:$0 sm:$0xff]  ;;  %s969_s7 = smov 128  }
 0x6d7   :  { %v733_v61 = vsub.f32 1.0, %v732_v20 }
 0x6d8   :  { %846 = vst.msk [vmem:[%s1251_s9 + $0x30] sm:$0xff] %vm124_vm3, %v639_v38  ;;  %848 = vmatmul.msk.f32.vlgmr.msra.gmra.mxu1 %vm124_vm3, %v639_v38  ;;  %v643_v17 = vmul.f32 %v923_v35, %v642_v39 }
 0x6d9   :  { %v734_v19 = vmul.f32 %v925_v62, %v733_v61 }
 0x6da   :  { %v644_v42 = vadd.f32 %v923_v35, %v643_v17 }
 0x6dc   :  { %v648_v10 = vsel %vm647_vm4, %v923_v35, %v644_v42 }
 0x6dd   :  { %v653_v43 = vsel %vm650_vm10, %v652_v9, %v648_v10 }
 0x6de   :  { %v654_v44 = vmul.f32 %v1189_v63, %v653_v43  ;;  %v735_v63 = vadd.f32 %v925_v62, %v734_v19 }
 0x6e0   :  { %847 = vst.msk [vmem:[%s1251_s9 + $0x38] sm:$0xff] %vm124_vm3, %v654_v44  ;;  %849 = vmatmul.msk.f32.gmra.mxu1 %vm124_vm3, %v654_v44 }
 0x6e8   :  { %v526_v45 = vpop.f32.mrf.mxu3 }
 0x6e9   :  { %840 = vmatmul.msk.f32.vlgmr.msrb.gmra.mxu2 %vm88_vm1, %v526_v45 }
 0x6f0   :  { %v529_v22 = vpop.f32.mrf.mxu3 }
 0x6f1   :  { %841 = vmatmul.msk.f32.gmra.mxu2 %vm88_vm1, %v529_v22 }
 0x755   :  { %v687_v46 = vpop.f32.mrf.mxu1 }
 0x756   :  { %850 = vmatmul.msk.f32.vlgmr.msrb.gmra.mxu3 %vm88_vm1, %v687_v46 }
 0x75d   :  { %v690_v47 = vpop.f32.mrf.mxu1 }
 0x75e   :  { %851 = vmatmul.msk.f32.gmra.mxu3 %vm88_vm1, %v690_v47  ;;  %vm736_vm1 = vweird.f32 %v925_v62 }
 0x75f   :  { %v737_v0 = vsel %vm736_vm1, %v925_v62, %v735_v63 }
 0x76c   :  { %v556_v50 = vpop.f32.mrf.mxu2 }
 0x76d   :  { %v562_v52 = vadd.f32 %v556_v50, %v401_v51 }
 0x774   :  { %v559_v56 = vpop.f32.mrf.mxu2 }
 0x775   :  { %v563_v57 = vadd.f32 %v559_v56, %v1170_v28 }
 0x7d9   :  { %v717_v53 = vpop.f32.mrf.mxu3 }
 0x7da   :  { %v723_v54 = vadd.f32 %v717_v53, %v562_v52 }
 0x7dc   :  { %v725_v55 = vsel %vm42_vm0, %v723_v54, 0.0 }
 0x7dd   :  { %726 = vadd.xlane.f32.xlu1 %v725_v55 }
 0x7e1   :  { %v720_v58 = vpop.f32.mrf.mxu3 }
 0x7e2   :  { %v724_v59 = vadd.f32 %v720_v58, %v563_v57 }
 0x7e4   :  { %v728_v60 = vsel %vm42_vm0, %v724_v59, 0.0 }
 0x7e5   :  { %729 = vadd.xlane.f32.xlu1 %v728_v60 }
 0x850   :  { %v727_v1 = vpop.xlane.xlu1 %726 }
 0x851   :  { %v738_v2 = vmul.f32 %v737_v0, %v727_v1 }
 0x853   :  { %v740_v3 = vsub.f32 %v723_v54, %v738_v2 }
 0x855   :  { %v742_v7 = vmul.f32 %v740_v3, %v740_v3 }
 0x857   :  { %v744_v28 = vsel %vm42_vm0, %v742_v7, 0.0 }
 0x858   :  { %745 = vadd.xlane.f32.xlu0 %v744_v28  ;;  %v730_v8 = vpop.xlane.xlu1 %729 }
 0x859   :  { %v739_v12 = vmul.f32 %v737_v0, %v730_v8 }
 0x85b   :  { %v741_v13 = vsub.f32 %v724_v59, %v739_v12 }
 0x85d   :  { %v743_v14 = vmul.f32 %v741_v13, %v741_v13 }
 0x85f   :  { %v747_v15 = vsel %vm42_vm0, %v743_v14, 0.0 }
 0x860   :  { %748 = vadd.xlane.f32.xlu1 %v747_v15 }
 0x8cb   :  { %v746_v16 = vpop.xlane.xlu0 %745 }
 0x8cc   :  { %v750_v18 = vmul.f32 %v746_v16, %v737_v0 }
 0x8ce   :  { %v752_v21 = vadd.f32 1e-05, %v750_v18 }
 0x8d0   :  { %926 = vrsqrt.f32 %v752_v21  ;;  %vm760_vm11 = vweird.f32 %v752_v21 }
 0x8d3   :  { %v749_v23 = vpop.xlane.xlu1 %748 }
 0x8d4   :  { %v751_v24 = vmul.f32 %v749_v23, %v737_v0 }
 0x8d6   :  { %v927_v25 = vpop.eup %926  ;;  %v753_v27 = vadd.f32 1e-05, %v751_v24 }
 0x8d7   :  { %v755_v26 = vmul.f32 %v927_v25, %v752_v21  ;;  %vm761_vm3 = vweird.f32 %v927_v25 }
 0x8d8   :  { %928 = vrsqrt.f32 %v753_v27  ;;  %vm762_vm12 = vmor %vm760_vm11, %vm761_vm3  ;;  %vm770_vm14 = vweird.f32 %v753_v27 }
 0x8d9   :  { %v756_v29 = vmul.f32 %v927_v25, %v755_v26 }
 0x8db   :  { %v757_v30 = vmul.f32 0.5, %v756_v29 }
 0x8dd   :  { %v758_v31 = vsub.f32 1.5, %v757_v30 }
 0x8de   :  { %v929_v11 = vpop.eup %928 }
 0x8df   :  { %v759_v32 = vmul.f32 %v927_v25, %v758_v31  ;;  %v765_v34 = vmul.f32 %v929_v11, %v753_v27  ;;  %vm771_vm13 = vweird.f32 %v929_v11 }
 0x8e0   :  { %vm772_vm15 = vmor %vm770_vm14, %vm771_vm13 }
 0x8e1   :  { %v763_v5 = vsel %vm762_vm12, %v927_v25, %v759_v32  ;;  %v766_v6 = vmul.f32 %v929_v11, %v765_v34 }
 0x8e2   :  { %v774_v35 = vmul.f32 %v763_v5, %v740_v3 }
 0x8e3   :  { %v767_v38 = vmul.f32 0.5, %v766_v6 }
 0x8e4   :  { %v780_v37 = vmul.f32 %v890_v33, %v774_v35 }
 0x8e5   :  { %v768_v39 = vsub.f32 1.5, %v767_v38 }
 0x8e6   :  { %v786_v40 = vadd.f32 %v891_v36, %v780_v37 }
 0x8e7   :  { %v769_v17 = vmul.f32 %v929_v11, %v768_v39 }
 0x8e8   :  { %788 = vst.msk [vmem:[#allocation2] sm:$0xff] %vm42_vm0, %v786_v40 }
 0x8e9   :  { %v773_v41 = vsel %vm772_vm15, %v929_v11, %v769_v17 }
 0x8ea   :  { %v775_v42 = vmul.f32 %v773_v41, %v741_v13 }
 0x8ec   :  { %v781_v9 = vmul.f32 %v890_v33, %v775_v42 }
 0x8ee   :  { %v787_v10 = vadd.f32 %v891_v36, %v781_v9 }
 0x8f0   :  { %789 = vst.msk [vmem:[#allocation2 + $0x8] sm:$0xff] %vm42_vm0, %v787_v10 }
 0x8f1   :  { %802 = dma.vmem_to_hbm [thread:$0]  %s795_s15, 256, %s797_s18, [#allocation3], %s969_s7, %s969_s7, %s970_s19  }
 0x8f2   :  { %954 = dma.done.wait [#allocation3], 256  }
 0x8f3   :  { %955 = vsyncadd [#allocation3], 4294967040 }
 0x8f4   :  { %811 = vsyncpa [#allocation3], 1 }

</bundles_post_ra>
